<compile_context>
chip_gen: v5e
topology: v5e:2x2
jax: 0.10.0
libtpu: 0.0.40
codegen_flags: <defaults>
</compile_context>

<pallas_src>
import functools

import jax
import jax.numpy as jnp
from jax.experimental import pallas as pl
from jax.experimental.pallas import tpu as pltpu

NEG_FILL = -1e15          # masked_fill value in the reference
LN_EPS = 1e-5             # torch.nn.LayerNorm default eps
_VMEM_LIMIT = 48 * 1024 * 1024


# ---------------------------------------------------------------------------
# helpers
# ---------------------------------------------------------------------------

def _pick_divisor_tile(n, target):
    """Largest multiple-of-8 divisor of n that is <= target, else n (full extent)."""
    if n <= target:
        return n
    best = n
    for t in range(8, target + 1, 8):
        if n % t == 0:
            best = t
    return best


# ---------------------------------------------------------------------------
# row-tiled linear:  y = x @ W.T + b   (PyTorch nn.Linear semantics)
# ---------------------------------------------------------------------------

def _linear_kernel(x_ref, wt_ref, b_ref, o_ref):
    x = x_ref[...].astype(jnp.bfloat16)                     # bf16 MXU operands
    acc = jnp.dot(x, wt_ref[...], preferred_element_type=jnp.float32)
    o_ref[...] = (acc + b_ref[...]).astype(o_ref.dtype)


def pallas_linear(x, wt_bf16, bias, out_dtype=jnp.float32, row_tile=512):
    """x: (..., T_in) f32; wt_bf16: (T_in, T_out) bf16 (= W.T); bias: (1, T_out) f32."""
    *lead, t_in = x.shape
    t_out = wt_bf16.shape[1]
    m = 1
    for d in lead:
        m *= d
    x2 = x.reshape(m, t_in)
    tm = _pick_divisor_tile(m, row_tile)
    out = pl.pallas_call(
        _linear_kernel,
        out_shape=jax.ShapeDtypeStruct((m, t_out), out_dtype),
        grid=(m // tm,),
        in_specs=[pl.BlockSpec((tm, t_in), lambda i: (i, 0)),
                  pl.BlockSpec((t_in, t_out), lambda i: (0, 0)),   # weight stays resident
                  pl.BlockSpec((1, t_out), lambda i: (0, 0))],     # bias stays resident
        out_specs=pl.BlockSpec((tm, t_out), lambda i: (i, 0)),
        compiler_params=pltpu.CompilerParams(
            dimension_semantics=("parallel",),
            vmem_limit_bytes=_VMEM_LIMIT),
    )(x2, wt_bf16, bias)
    return out.reshape(*lead, t_out)


# ---------------------------------------------------------------------------
# fused relative attention + residual + LayerNorm
# ---------------------------------------------------------------------------

def _attn_ln_kernel(len_ref, q_ref, k_ref, v_ref, r_ref, u_ref, vb_ref,
                    inp_ref, g_ref, bt_ref, o_ref, m_scr, l_scr, acc_scr,
                    *, num_head, head_dim):
    b = pl.program_id(0)
    j = pl.program_id(2)
    nj = pl.num_programs(2)
    ti = q_ref.shape[0]
    tj = k_ref.shape[0]

    @pl.when(j == 0)
    def _init():
        m_scr[...] = jnp.full(m_scr.shape, -jnp.inf, m_scr.dtype)
        l_scr[...] = jnp.zeros(l_scr.shape, l_scr.dtype)
        acc_scr[...] = jnp.zeros(acc_scr.shape, acc_scr.dtype)

    # column validity for this key tile  (seq_len_to_mask in the reference)
    length = len_ref[b]
    col = jax.lax.broadcasted_iota(jnp.int32, (ti, tj), 1) + j * tj
    valid = col < length

    q = q_ref[...]                                          # (ti, T) f32
    qu = (q + u_ref[...]).astype(jnp.bfloat16)              # hoisted once per tile
    qv = (q + vb_ref[...]).astype(jnp.bfloat16)
    k = k_ref[...].astype(jnp.bfloat16)                     # (tj, T)
    vv = v_ref[...].astype(jnp.bfloat16)                    # (tj, T)
    r = r_ref[...].astype(jnp.bfloat16)                     # (ti, tj, T) natural layout

    for h in range(num_head):                               # static unroll over heads
        sl = slice(h * head_dim, (h + 1) * head_dim)
        qu_h, qv_h = qu[:, sl], qv[:, sl]                   # (ti, D)
        k_h, v_h = k[:, sl], vv[:, sl]                      # (tj, D)
        r_h = r[:, :, sl]                                   # (ti, tj, D)

        # A+C: (q + u) @ k^T   (MXU, contract D)
        ac = jax.lax.dot_general(qu_h, k_h, (((1,), (1,)), ((), ())),
                                 preferred_element_type=jnp.float32)        # (ti, tj)
        # B+D: batched contraction over D with batch dim = query row i (MXU);
        # never materializes an (S, D, S) intermediate.
        bd = jax.lax.dot_general(qv_h[:, None, :], r_h,
                                 (((2,), (2,)), ((0,), (0,))),
                                 preferred_element_type=jnp.float32)[:, 0, :]
        s = jnp.where(valid, ac + bd, NEG_FILL)

        # online-softmax update for this head
        m_prev = m_scr[:, h:h + 1]
        l_prev = l_scr[:, h:h + 1]
        m_new = jnp.maximum(m_prev, jnp.max(s, axis=-1, keepdims=True))
        alpha = jnp.exp(m_prev - m_new)
        p = jnp.exp(s - m_new)                              # (ti, tj) f32
        l_scr[:, h:h + 1] = alpha * l_prev + jnp.sum(p, axis=-1, keepdims=True)
        pv = jnp.dot(p.astype(jnp.bfloat16), v_h,
                     preferred_element_type=jnp.float32)                    # (ti, D)
        acc_scr[:, sl] = alpha * acc_scr[:, sl] + pv
        m_scr[:, h:h + 1] = m_new

    @pl.when(j == nj - 1)
    def _finalize():
        # per-head softmax normalization (EUP reciprocal), then fused residual + LayerNorm
        for h in range(num_head):
            sl = slice(h * head_dim, (h + 1) * head_dim)
            inv = pl.reciprocal(l_scr[:, h:h + 1], approx=True)
            acc_scr[:, sl] = acc_scr[:, sl] * inv
        z = inp_ref[...] + acc_scr[...]                     # residual add, f32
        mean = jnp.mean(z, axis=-1, keepdims=True)
        c = z - mean
        var = jnp.mean(c * c, axis=-1, keepdims=True)
        o_ref[...] = c * jax.lax.rsqrt(var + LN_EPS) * g_ref[...] + bt_ref[...]


def _attn_seq_tiles(seq_len, total, r_itemsize):
    ti = _pick_divisor_tile(seq_len, 128)
    # keep the streamed rel block (ti, tj, total) at <= ~8 MiB per pipeline buffer
    budget = 8 * 1024 * 1024
    tj_target = max(8, min(128, budget // max(1, ti * total * r_itemsize)))
    tj = _pick_divisor_tile(seq_len, int(tj_target))
    return ti, tj


def pallas_rel_attention_ln(q, k, v, rel, u_flat, v_flat, residual, ln_gamma,
                            ln_beta, lengths, num_head, head_dim):
    """q/k/v/residual: (B,S,T) f32; rel: (B,S,S,T) (bf16 or f32, natural layout);
    u/v/gamma/beta: (1,T) f32; lengths: (B,) int32.  Returns (B,S,T) f32."""
    B, S, T = q.shape
    ti, tj = _attn_seq_tiles(S, T, jnp.dtype(rel.dtype).itemsize)
    ni, nj = S // ti, S // tj

    kernel = functools.partial(_attn_ln_kernel, num_head=num_head, head_dim=head_dim)
    grid_spec = pltpu.PrefetchScalarGridSpec(
        num_scalar_prefetch=1,
        grid=(B, ni, nj),
        in_specs=[
            pl.BlockSpec((None, ti, T), lambda b, i, j, L: (b, i, 0)),        # q
            pl.BlockSpec((None, tj, T), lambda b, i, j, L: (b, j, 0)),        # k
            pl.BlockSpec((None, tj, T), lambda b, i, j, L: (b, j, 0)),        # v
            pl.BlockSpec((None, ti, tj, T), lambda b, i, j, L: (b, i, j, 0)), # rel (no transpose)
            pl.BlockSpec((1, T), lambda b, i, j, L: (0, 0)),                  # u
            pl.BlockSpec((1, T), lambda b, i, j, L: (0, 0)),                  # v (param)
            pl.BlockSpec((None, ti, T), lambda b, i, j, L: (b, i, 0)),        # residual input
            pl.BlockSpec((1, T), lambda b, i, j, L: (0, 0)),                  # LN gamma
            pl.BlockSpec((1, T), lambda b, i, j, L: (0, 0)),                  # LN beta
        ],
        out_specs=pl.BlockSpec((None, ti, T), lambda b, i, j, L: (b, i, 0)),  # lane-dense (S,T)
        scratch_shapes=[
            pltpu.VMEM((ti, num_head), jnp.float32),   # running max per head
            pltpu.VMEM((ti, num_head), jnp.float32),   # running denom per head
            pltpu.VMEM((ti, T), jnp.float32),          # lane-dense output accumulator
        ],
    )
    return pl.pallas_call(
        kernel,
        out_shape=jax.ShapeDtypeStruct((B, S, T), jnp.float32),
        grid_spec=grid_spec,
        compiler_params=pltpu.CompilerParams(
            dimension_semantics=("parallel", "parallel", "arbitrary"),
            vmem_limit_bytes=_VMEM_LIMIT),
    )(lengths, q, k, v, rel, u_flat, v_flat, residual, ln_gamma, ln_beta)


# ---------------------------------------------------------------------------
# Module wrapper (parameter setup / cheap reshapes are plain-JAX glue)
# ---------------------------------------------------------------------------

class MultiHeadAttentionForWubi:
    def __init__(self, num_head, hidden_size, q_proj, k_proj, v_proj, r_proj, rng_key):
        self.num_head = num_head
        self.hidden_size = hidden_size
        self.total = num_head * hidden_size                 # == Config.total in the reference
        self.q_proj, self.k_proj, self.v_proj, self.r_proj = q_proj, k_proj, v_proj, r_proj

        T = self.total
        keys = jax.random.split(rng_key, 10)
        bound = 1.0 / (T ** 0.5)                            # nn.Linear default init range

        def linear_init(kw, kb):
            w = jax.random.uniform(kw, (T, T), jnp.float32, -bound, bound)   # (out, in)
            b = jax.random.uniform(kb, (T,), jnp.float32, -bound, bound)
            # store W.T in bf16 (MXU-native, halves weight HBM bytes); bias stays f32
            return w.T.astype(jnp.bfloat16), b.reshape(1, T)

        self.wq_t, self.bq = linear_init(keys[0], keys[1])
        self.wk_t, self.bk = linear_init(keys[2], keys[3])
        self.wv_t, self.bv = linear_init(keys[4], keys[5])
        self.wr_t, self.br = linear_init(keys[6], keys[7])
        # u, v are nn.Parameter(torch.Tensor(H, D)) (uninitialized in the ref):
        # use deterministic small normals, kept flattened (1, T) to match the lane layout.
        self.u = 0.02 * jax.random.normal(keys[8], (num_head, hidden_size), jnp.float32)
        self.v = 0.02 * jax.random.normal(keys[9], (num_head, hidden_size), jnp.float32)
        self.u_flat = self.u.reshape(1, T)
        self.v_flat = self.v.reshape(1, T)
        # reference builds a fresh nn.LayerNorm(Config.total) in forward: gamma=1, beta=0
        self.ln_gamma = jnp.ones((1, T), jnp.float32)
        self.ln_beta = jnp.zeros((1, T), jnp.float32)

    def __call__(self, query, key, value, lex_num, real_lengths, rel_pos_embedding):
        del lex_num  # unused by the reference forward
        assert query.shape[-1] == self.total
        residual = query
        if self.q_proj:
            query = pallas_linear(query, self.wq_t, self.bq)
        if self.k_proj:
            key = pallas_linear(key, self.wk_t, self.bk)
        if self.v_proj:
            value = pallas_linear(value, self.wv_t, self.bv)
        if self.r_proj:
            # Emit the projected relative embedding directly in bf16: it is only ever
            # consumed as a matmul operand, and this halves HBM traffic of the dominant
            # (B, S, S, T) tensor.
            rel_pos_embedding = pallas_linear(rel_pos_embedding, self.wr_t, self.br,
                                              out_dtype=jnp.bfloat16)
        lengths = jnp.asarray(real_lengths, dtype=jnp.int32)
        return pallas_rel_attention_ln(query, key, value, rel_pos_embedding,
                                       self.u_flat, self.v_flat, residual,
                                       self.ln_gamma, self.ln_beta, lengths,
                                       self.num_head, self.hidden_size)


# ---------------------------------------------------------------------------
# pure-JAX reference (mirrors the PyTorch forward) for a sanity check
# ---------------------------------------------------------------------------

def _reference_forward(mod, query, key, value, real_lengths, rel):
    B, S, T = query.shape
    H, D = mod.num_head, mod.hidden_size

    def lin(x, wt, b):
        return x @ wt.astype(jnp.float32) + b

    inp = query
    q = lin(query, mod.wq_t, mod.bq) if mod.q_proj else query
    k = lin(key, mod.wk_t, mod.bk) if mod.k_proj else key
    v = lin(value, mod.wv_t, mod.bv) if mod.v_proj else value
    r = lin(rel, mod.wr_t, mod.br) if mod.r_proj else rel

    q = q.reshape(B, S, H, D).transpose(0, 2, 1, 3)
    k = k.reshape(B, S, H, D).transpose(0, 2, 1, 3)
    v = v.reshape(B, S, H, D).transpose(0, 2, 1, 3)
    r = r.reshape(B, S, S, H, D).transpose(0, 3, 1, 4, 2)            # (B,H,Si,D,Sj)
    u = mod.u_flat.reshape(H, D)
    vp = mod.v_flat.reshape(H, D)

    ac = jnp.einsum('bhid,bhjd->bhij', q + u[None, :, None, :], k)
    bd = jnp.einsum('bhid,bhidj->bhij', q + vp[None, :, None, :], r)
    score = ac + bd
    lengths = jnp.asarray(real_lengths, jnp.int32)
    mask = jnp.arange(S)[None, :] < lengths[:, None]                 # (B, S)
    score = jnp.where(mask[:, None, None, :], score, NEG_FILL)
    p = jax.nn.softmax(score, axis=-1)
    out = jnp.einsum('bhij,bhjd->bhid', p, v)
    out = out.transpose(0, 2, 1, 3).reshape(B, S, T)
    z = inp + out
    mean = jnp.mean(z, axis=-1, keepdims=True)
    var = jnp.mean((z - mean) ** 2, axis=-1, keepdims=True)
    return (z - mean) * jax.lax.rsqrt(var + LN_EPS)


if __name__ == "__main__":
    B, S, H, D = 2, 8, 2, 16
    T = H * D
    root = jax.random.PRNGKey(0)
    k1, k2, k3, k4, k5 = jax.random.split(root, 5)

    query = jax.random.normal(k1, (B, S, T), jnp.float32)
    key_t = jax.random.normal(k2, (B, S, T), jnp.float32)
    value = jax.random.normal(k3, (B, S, T), jnp.float32)
    rel = jax.random.normal(k4, (B, S, S, T), jnp.float32)
    real_lengths = [8, 5]

    module = MultiHeadAttentionForWubi(H, D, True, True, True, True, k5)
    out = module(query, key_t, value, 0, real_lengths, rel)
    out = jax.block_until_ready(out)
    assert out.shape == (B, S, T)
    assert bool(jnp.all(jnp.isfinite(out)))

    ref = _reference_forward(module, query, key_t, value, real_lengths, rel)
    err = float(jnp.max(jnp.abs(out - ref)))
    assert err < 0.2, f"max abs error vs reference too large: {err}"
    print("KERNEL_OK")
</pallas_src>

<mosaic_0001>
module attributes {stable_mosaic.version = 11 : i64} {
  func.func @_linear_kernel(%arg0: i32, %arg1: memref<16x32xf32, #tpu.memory_space<vmem>>, %arg2: memref<32x32xbf16, #tpu.memory_space<vmem>>, %arg3: memref<1x32xf32, #tpu.memory_space<vmem>>, %arg4: memref<16x32xf32, #tpu.memory_space<vmem>>) attributes {dimension_semantics = [#tpu.dimension_semantics<parallel>], iteration_bounds = array<i64: 1>, scalar_prefetch = 0 : i64, scratch_operands = 0 : i64, tpu.core_type = #tpu.core_type<tc>, window_params = [{transform_indices = @transform_0, window_bounds = array<i64: 16, 32>}, {pipeline_mode = #tpu.pipeline_mode<synchronous>, transform_indices = @transform_1, window_bounds = array<i64: 32, 32>}, {pipeline_mode = #tpu.pipeline_mode<synchronous>, transform_indices = @transform_2, window_bounds = array<i64: 1, 32>}, {transform_indices = @transform_3, window_bounds = array<i64: 16, 32>}]} {
    %c0 = arith.constant 0 : index
    %c0_0 = arith.constant 0 : index
    %0 = vector.load %arg1[%c0, %c0_0] : memref<16x32xf32, #tpu.memory_space<vmem>>, vector<16x32xf32>
    %1 = arith.truncf %0 : vector<16x32xf32> to vector<16x32xbf16>
    %c0_1 = arith.constant 0 : index
    %c0_2 = arith.constant 0 : index
    %2 = vector.load %arg2[%c0_1, %c0_2] : memref<32x32xbf16, #tpu.memory_space<vmem>>, vector<32x32xbf16>
    %cst = arith.constant dense<0.000000e+00> : vector<16x32xf32>
    %3 = tpu.matmul %1, %2, %cst {dimension_numbers = #tpu.dot_dimension_numbers<[1], [0], [0], [1], [0, 0, 1, 1], [], []>} : vector<16x32xbf16>, vector<32x32xbf16>, vector<16x32xf32> -> vector<16x32xf32>
    %c0_3 = arith.constant 0 : index
    %c0_4 = arith.constant 0 : index
    %4 = vector.load %arg3[%c0_3, %c0_4] : memref<1x32xf32, #tpu.memory_space<vmem>>, vector<1x32xf32>
    %5 = vector.broadcast %4 : vector<1x32xf32> to vector<16x32xf32>
    %6 = arith.addf %3, %5 : vector<16x32xf32>
    %c0_5 = arith.constant 0 : index
    %c0_6 = arith.constant 0 : index
    %7 = vector.load %arg4[%c0_5, %c0_6] : memref<16x32xf32, #tpu.memory_space<vmem>>, vector<16x32xf32>
    tpu.vector_store %arg4[%c0_5, %c0_6], %6 {strides = array<i32>} : memref<16x32xf32, #tpu.memory_space<vmem>>, vector<16x32xf32>,
    return
  }
  func.func @transform_0(%arg0: i32) -> (i32, i32) {
    %c0_i32 = arith.constant 0 : i32
    %c0_i32_0 = arith.constant 0 : i32
    return %arg0, %c0_i32 : i32, i32
  }
  func.func @transform_1(%arg0: i32) -> (i32, i32) {
    %c0_i32 = arith.constant 0 : i32
    %c0_i32_0 = arith.constant 0 : i32
    %c0_i32_1 = arith.constant 0 : i32
    return %c0_i32, %c0_i32_0 : i32, i32
  }
  func.func @transform_2(%arg0: i32) -> (i32, i32) {
    %c0_i32 = arith.constant 0 : i32
    %c0_i32_0 = arith.constant 0 : i32
    %c0_i32_1 = arith.constant 0 : i32
    return %c0_i32, %c0_i32_0 : i32, i32
  }
  func.func @transform_3(%arg0: i32) -> (i32, i32) {
    %c0_i32 = arith.constant 0 : i32
    %c0_i32_0 = arith.constant 0 : i32
    return %arg0, %c0_i32 : i32, i32
  }
}

</mosaic_0001>

<bundles_post_ra>
// kernel: tpu_custom_call.1
= control target key start
LH: loop header
LB: loop body
LE: loop exit
PB: predicated region body
PF: predicated region fallthrough
CT: control target
= control target key end

     0   :  { %8 = vsyncpa [#allocation3], 0  ;;  %s253_s0 = inlined_call_operand.hbm [shape: f32[16,32], index: 0, kind: input, shape index: {}]   ;;  %s254_s1 = inlined_call_operand.hbm [shape: bf16[32,32], index: 1, kind: input, shape index: {}]   ;;  %s255_s2 = inlined_call_operand.vmem [shape: f32[1,32], index: 2, kind: input, shape index: {}]   ;;  %s256_s3 = inlined_call_operand.hbm [shape: f32[16,32], index: 3, kind: output, shape index: {}]  }
   0x1   :  { %9 = vsyncpa [#allocation6], 0 }
   0x2   :  { %10 = vsyncpa [#allocation4], 0  ;;  %s15_s14 = sshll.u32 %s253_s0, 4  ;;  %s208_s15 = smov [#allocation2]   ;;  %s16_s14 = int_to_ptr.hbm [resolvable:$true] %s15_s14 }
   0x3   :  { %s17_s16 = sshll.u32 %s208_s15, 4  ;;  %s28_s19 = sshll.u32 %s254_s1, 4  ;;  %s18_s16 = int_to_ptr.vmem [resolvable:$true] %s17_s16  ;;  %s29_s19 = int_to_ptr.hbm [resolvable:$true] %s28_s19 }
   0x4   :  { %s209_s20 = smov 128   ;;  %s210_s21 = smov 8  }
   0x5   :  { %23 = dma.hbm_to_vmem [thread:$0]  %s16_s14, 256, %s18_s16, [#allocation3], %s209_s20, %s209_s20, %s210_s21  }
   0x6   :  { %s211_s22 = smov [#allocation5]   ;;  %s212_s24 = smov 64  }
   0x7   :  { %s30_s23 = sshll.u32 %s211_s22, 4  ;;  %s213_s0 = smov 4   ;;  %s31_s23 = int_to_ptr.vmem [resolvable:$true] %s30_s23 }
   0x8   :  { %36 = dma.hbm_to_vmem [thread:$0]  %s29_s19, 256, %s31_s23, [#allocation6], %s212_s24, %s212_s24, %s213_s0  }
   0x9   :  { %202 = dma.done.wait [#allocation3], 256  }
   0xa   :  { %203 = vsyncadd [#allocation3], 4294967040 }
   0xb   :  { %204 = dma.done.wait [#allocation6], 256  }
   0xc   :  { %205 = vsyncadd [#allocation6], 4294967040  ;;  %v121_v0 = vld [vmem:[#allocation5 + $0x8] sm:$0xff]  ;;  %v120_v1 = vld [vmem:[#allocation5] sm:$0xff]  ;;  %vm71_vm0 = vcmask 261120   ;;  %s214_s26 = smov [#allocation7]  }
   0xd   :  { %81 = vmatpush.bf16.msra.mxu0 %v121_v0  ;;  %v48_v2 = vld [vmem:[#allocation2] sm:$0xff]  ;;  %v49_v3 = vld [vmem:[#allocation2 + $0x8] sm:$0xff]  ;;  %s95_s27 = sshll.u32 %s214_s26, 4  ;;  %s97_s30 = sshll.u32 %s256_s3, 4  ;;  %s96_s27 = int_to_ptr.vmem [resolvable:$true] %s95_s27  ;;  %s98_s30 = int_to_ptr.hbm [resolvable:$true] %s97_s30 }
   0xe   :  { %v50_v4 = vpack.c.bf16 %v49_v3, %v48_v2  ;;  %v129_v5 = vld [vmem:[%s255_s2] ss:$0 sm:$0xff] }
  0x11   :  { %82 = vmatpush.bf16.msra.mxu0 %v120_v1 }
  0x14   :  { %119 = vmatmul.msk.bf16.vlgmr.msra.gmra.mxu0 %vm71_vm0, %v50_v4 }
  0x91   :  { %v84_v6 = vpop.f32.mrf.mxu0 }
  0x92   :  { %v85_v7 = vadd.f32 %v129_v5, %v84_v6 }
  0x94   :  { %89 = vst.msk [vmem:[#allocation7] sm:$0xff] %vm71_vm0, %v85_v7 }
  0x99   :  { %v86_v8 = vpop.f32.mrf.mxu0 }
  0x9a   :  { %v87_v9 = vadd.f32 %v129_v5, %v86_v8 }
  0x9c   :  { %90 = vst.msk [vmem:[#allocation7 + $0x8] sm:$0xff] %vm71_vm0, %v87_v9 }
  0x9d   :  { %103 = dma.vmem_to_hbm [thread:$0]  %s96_s27, 256, %s98_s30, [#allocation4], %s209_s20, %s209_s20, %s210_s21  }
  0x9e   :  { %206 = dma.done.wait [#allocation4], 256  }
  0x9f   :  { %207 = vsyncadd [#allocation4], 4294967040 }
  0xa0   :  { %108 = vsyncpa [#allocation3], 1 }
  0xa1   :  { %109 = vsyncpa [#allocation6], 1 }
  0xa2   :  { %110 = vsyncpa [#allocation4], 1 }

</bundles_post_ra>
